<compile_context>
chip_gen: v5e
topology: v5e:2x2
jax: 0.10.0
libtpu: 0.0.40
codegen_flags: <defaults>
</compile_context>

<pallas_src>
import jax
import jax.numpy as jnp
from jax.experimental import pallas as pl
from jax.experimental.pallas import tpu as pltpu


def _round_up(x, m):
    return ((x + m - 1) // m) * m


def _padded_bytes(rows, cols, itemsize):
    """VMEM footprint of a 2-D tile after (8, 128) layout padding."""
    return _round_up(max(rows, 1), 8) * _round_up(max(cols, 1), 128) * itemsize


def qnet_kernel(e_u_ref, e_v_ref,
                w1t_ref, b1_ref,
                w2vt_ref, b2v_ref, wov_ref, bov_ref,
                w2axt_ref, w2avt_ref, b2a_ref, woa_ref, boa_ref,
                adv_ref, val_ref,
                xb_sc):
    """One (batch-tile i, candidate-chunk j) grid step.

    Axis i is "parallel", axis j is the innermost "arbitrary" axis, so the
    per-batch-tile work below (guarded by j == 0) runs once per tile and its
    result stays valid in scratch / in the resident value-output block for all
    candidate chunks of that tile.
    """
    j = pl.program_id(1)
    TB, TC, E = e_v_ref.shape
    H = w1t_ref.shape[1]

    @pl.when(j == 0)
    def _per_batch_tile():
        # fc1 + relu: bf16 MXU operands, f32 accumulation / elementwise.
        x = jnp.maximum(
            jnp.dot(e_u_ref[...], w1t_ref[...],
                    preferred_element_type=jnp.float32) + b1_ref[...], 0.0)
        xc = x.astype(w2vt_ref.dtype)

        # Value head: fc2_value + relu, out_value as a lane (XLU) reduction.
        hv = jnp.maximum(
            jnp.dot(xc, w2vt_ref[...],
                    preferred_element_type=jnp.float32) + b2v_ref[...], 0.0)
        val_ref[...] = (jnp.sum(hv * wov_ref[...], axis=-1, keepdims=True)
                        + bov_ref[...])

        # x-part of fc2_advantage with b2a folded in once per batch row
        # (removes the bias add from the per-[TB, TC, H] VALU epilogue).
        xb_sc[...] = (jnp.dot(xc, w2axt_ref[...],
                              preferred_element_type=jnp.float32)
                      + b2a_ref[...])

    # Advantage head for this candidate chunk only.
    ev = e_v_ref[...].reshape(TB * TC, E)      # 8-aligned merge, layout-free
    ev_part = jnp.dot(ev, w2avt_ref[...],
                      preferred_element_type=jnp.float32)           # [TB*TC, H]
    h = jnp.maximum(ev_part.reshape(TB, TC, H) + xb_sc[...][:, None, :], 0.0)
    adv_ref[...] = (jnp.sum(h * woa_ref[...][None], axis=-1)
                    + boa_ref[...])                                  # [TB, TC]


def qnet_forward(e_u, e_v, params, *, compute_dtype=jnp.bfloat16):
    """QNet forward (choose_action=True, bn_flag=False) via Pallas.

    Pass compute_dtype=jnp.float32 for exact parity with the f32 PyTorch
    module (bf16 matmul operands can flip argmax on near-tied Q-values).
    """
    B, C, E = e_v.shape
    H = params["w1"].shape[0]
    cbytes = jnp.dtype(compute_dtype).itemsize

    # ---- candidate tiling: sublane-aligned, not blown up to 128 -------------
    C8 = _round_up(max(C, 1), 8)
    if C8 <= 256:
        TC = C8            # single chunk; block == full axis (masked vst is noise)
    else:
        TC = 128           # lane-dense chunks for large candidate sets
    C_pad = _round_up(max(C, 1), TC)
    n_cchunks = C_pad // TC

    # ---- chip-aware VMEM budget ---------------------------------------------
    try:
        vmem_cap = int(pltpu.get_tpu_info().vmem_capacity_bytes)
        if vmem_cap <= 0:
            raise ValueError("bad vmem capacity")
    except Exception:
        vmem_cap = 64 * 1024 * 1024            # conservative v7x-sized fallback
    vmem_limit = int(vmem_cap * 0.75)          # ~96 MiB on v5e/v6e, ~48 MiB on v7x
    tile_budget = int(vmem_cap * 0.45)         # activation working-set target

    # Weights/biases are grid-invariant but still double-buffered by default;
    # count them (x2) explicitly instead of relying on Buffered(1).
    fixed = 2 * (2 * _padded_bytes(E, H, cbytes)        # w1_t, w2a_v_t
                 + 2 * _padded_bytes(H, H, cbytes)      # w2v_t, w2a_x_t
                 + 5 * _padded_bytes(1, H, 4)           # b1, b2v, wov, b2a, woa
                 + 2 * _padded_bytes(1, 1, 4))          # bov, boa

    e_lane = _round_up(E, 128)                 # narrow-E tiles are lane-padded
    h_lane = _round_up(H, 128)
    per_row = (2 * e_lane * cbytes                      # e_u tile (dbl-buffered)
               + 2 * TC * e_lane * cbytes               # e_v tile (dbl-buffered)
               + 2 * _round_up(TC, 128) * 4             # adv out tile (f32)
               + 2 * 128 * 4                            # value out tile (f32)
               + h_lane * 4                             # xb scratch (f32)
               + int(2.5 * TC * h_lane * 4))            # f32 ev_part/h intermediates

    avail = max(tile_budget - fixed, 8 * per_row)
    TB = (avail // per_row) // 8 * 8
    TB = int(max(8, min(TB, 1024, _round_up(B, 8))))
    B_pad = _round_up(B, TB)
    grid = (B_pad // TB, n_cchunks)

    # ---- wrapper-side layout prep (no in-kernel transposes / splits) --------
    w1_t = params["w1"].T.astype(compute_dtype)                  # [E, H]
    w2v_t = params["w2v"].T.astype(compute_dtype)                # [H, H]
    w2a = params["w2a"]
    w2a_x_t = w2a[:, :H].T.astype(compute_dtype)                 # [H, H]
    w2a_v_t = w2a[:, H:].T.astype(compute_dtype)                 # [E, H]

    b1 = params["b1"].astype(jnp.float32)
    b2v = params["b2v"].astype(jnp.float32)
    wov = params["wov"].astype(jnp.float32)
    bov = params["bov"].astype(jnp.float32)
    b2a = params["b2a"].astype(jnp.float32)
    woa = params["woa"].astype(jnp.float32)
    boa = params["boa"].astype(jnp.float32)

    # Only the minimal tiling padding (no 16x zero-inflated HBM copy).
    e_u_p = jnp.pad(e_u.astype(compute_dtype), ((0, B_pad - B), (0, 0)))
    e_v_p = jnp.pad(e_v.astype(compute_dtype),
                    ((0, B_pad - B), (0, C_pad - C), (0, 0)))

    def const(arr):   # weights/biases: VMEM-resident across all grid steps
        return pl.BlockSpec(arr.shape, lambda i, j: (0, 0))

    adv_pad, val_pad = pl.pallas_call(
        qnet_kernel,
        out_shape=(jax.ShapeDtypeStruct((B_pad, C_pad), jnp.float32),
                   jax.ShapeDtypeStruct((B_pad, 1), jnp.float32)),
        grid_spec=pltpu.PrefetchScalarGridSpec(
            num_scalar_prefetch=0,
            grid=grid,
            in_specs=[
                pl.BlockSpec((TB, E), lambda i, j: (i, 0)),        # e_u tile
                pl.BlockSpec((TB, TC, E), lambda i, j: (i, j, 0)), # e_v chunk
                const(w1_t), const(b1),
                const(w2v_t), const(b2v), const(wov), const(bov),
                const(w2a_x_t), const(w2a_v_t), const(b2a), const(woa), const(boa),
            ],
            out_specs=[
                pl.BlockSpec((TB, TC), lambda i, j: (i, j)),       # adv
                pl.BlockSpec((TB, 1), lambda i, j: (i, 0)),        # value
            ],
            scratch_shapes=[pltpu.VMEM((TB, H), jnp.float32)],     # xb cache
        ),
        compiler_params=pltpu.CompilerParams(
            dimension_semantics=("parallel", "arbitrary"),
            vmem_limit_bytes=vmem_limit),
    )(e_u_p, e_v_p, w1_t, b1, w2v_t, b2v, wov, bov,
      w2a_x_t, w2a_v_t, b2a, woa, boa)

    # Cheap O(B*C) dueling combine in XLA; padded rows/cols never escape here.
    adv = adv_pad[:B, :C]
    value = val_pad[:B]
    return adv + value - jnp.mean(adv, axis=1, keepdims=True)


def make_params(key, e_dim, hidden_dim):
    """Deterministic synthetic parameters matching PyTorch Linear shapes."""
    ks = jax.random.split(key, 10)

    def lin(kw, kb, out_f, in_f):
        bound = 1.0 / (in_f ** 0.5)
        w = jax.random.uniform(kw, (out_f, in_f), jnp.float32, -bound, bound)
        b = jax.random.uniform(kb, (out_f,), jnp.float32, -bound, bound)
        return w, b

    w1, b1 = lin(ks[0], ks[1], hidden_dim, e_dim)                    # fc1
    w2v, b2v = lin(ks[2], ks[3], hidden_dim, hidden_dim)             # fc2_value
    wov, bov = lin(ks[4], ks[5], 1, hidden_dim)                      # out_value
    w2a, b2a = lin(ks[6], ks[7], hidden_dim, hidden_dim + e_dim)     # fc2_advantage
    woa, boa = lin(ks[8], ks[9], 1, hidden_dim)                      # out_advantage

    return dict(
        w1=w1, b1=b1.reshape(1, hidden_dim),
        w2v=w2v, b2v=b2v.reshape(1, hidden_dim),
        wov=wov, bov=bov.reshape(1, 1),
        w2a=w2a, b2a=b2a.reshape(1, hidden_dim),
        woa=woa, boa=boa.reshape(1, 1),
    )


def qnet_reference(e_u, e_v, p, compute_dtype=jnp.float32):
    """Plain-JAX reference mirroring the PyTorch forward exactly.

    `compute_dtype` controls the matmul-operand dtype (f32 accumulation), so
    it can mirror the kernel's bf16 MXU path or stay full f32.
    """
    B, C, E = e_v.shape
    H = p["w1"].shape[0]
    cd = compute_dtype

    def mm(a, w):  # a @ w.T with PyTorch-layout weight w [out, in]
        return jnp.dot(a.astype(cd), w.T.astype(cd),
                       preferred_element_type=jnp.float32)

    x = jnp.maximum(mm(e_u, p["w1"]) + p["b1"], 0.0)                         # [B, H]
    hv = jnp.maximum(mm(x, p["w2v"]) + p["b2v"], 0.0)                        # [B, H]
    value = jnp.sum(hv * p["wov"], axis=-1, keepdims=True) + p["bov"]        # [B, 1]
    x_part = mm(x, p["w2a"][:, :H])                                          # [B, H]
    ev_part = mm(e_v.reshape(B * C, E), p["w2a"][:, H:]).reshape(B, C, H)
    h = jnp.maximum(x_part[:, None, :] + ev_part + p["b2a"][None], 0.0)      # [B, C, H]
    adv = jnp.sum(h * p["woa"][None], axis=-1) + p["boa"]                    # [B, C]
    return adv + value - jnp.mean(adv, axis=1, keepdims=True)


if __name__ == "__main__":
    key = jax.random.PRNGKey(0)
    k1, k2 = jax.random.split(key)

    # ---- Case 1: small shapes consistent with the module defaults ----------
    B, C, E, H = 2, 8, 32, 32   # batch, candi_num, e_dim, hidden_dim
    k_eu, k_ev, k_par = jax.random.split(k1, 3)
    e_u = jax.random.normal(k_eu, (B, E), jnp.float32)
    e_v = jax.random.normal(k_ev, (B, C, E), jnp.float32)
    params = make_params(k_par, E, H)

    qsa = qnet_forward(e_u, e_v, params)
    jax.block_until_ready(qsa)
    assert qsa.shape == (B, C)

    # Tight check vs a reference using the same bf16 matmul operands.
    ref_bf16 = qnet_reference(e_u, e_v, params, compute_dtype=jnp.bfloat16)
    assert jnp.allclose(qsa, ref_bf16, atol=2e-3, rtol=2e-3), "mismatch vs bf16 reference"

    # Semantic check vs the full-f32 reference (only bf16 rounding differs).
    ref_f32 = qnet_reference(e_u, e_v, params, compute_dtype=jnp.float32)
    assert jnp.allclose(qsa, ref_f32, atol=8e-2, rtol=8e-2), "mismatch vs f32 reference"

    # ---- Case 2: exercises batch padding + the 128-wide candidate-chunk axis
    B2, C2, E2, H2 = 5, 300, 48, 64
    k_eu2, k_ev2, k_par2 = jax.random.split(k2, 3)
    e_u2 = jax.random.normal(k_eu2, (B2, E2), jnp.float32)
    e_v2 = jax.random.normal(k_ev2, (B2, C2, E2), jnp.float32)
    params2 = make_params(k_par2, E2, H2)

    qsa2 = qnet_forward(e_u2, e_v2, params2)
    jax.block_until_ready(qsa2)
    assert qsa2.shape == (B2, C2)
    ref2 = qnet_reference(e_u2, e_v2, params2, compute_dtype=jnp.bfloat16)
    assert jnp.allclose(qsa2, ref2, atol=5e-3, rtol=5e-3), "mismatch (chunked path)"

    print("KERNEL_OK")
</pallas_src>

<mosaic_0001>
module attributes {stable_mosaic.version = 11 : i64} {
  func.func @qnet_kernel(%arg0: i32, %arg1: i32, %arg2: memref<8x32xbf16, #tpu.memory_space<vmem>>, %arg3: memref<8x8x32xbf16, #tpu.memory_space<vmem>>, %arg4: memref<32x32xbf16, #tpu.memory_space<vmem>>, %arg5: memref<1x32xf32, #tpu.memory_space<vmem>>, %arg6: memref<32x32xbf16, #tpu.memory_space<vmem>>, %arg7: memref<1x32xf32, #tpu.memory_space<vmem>>, %arg8: memref<1x32xf32, #tpu.memory_space<vmem>>, %arg9: memref<1x1xf32, #tpu.memory_space<vmem>>, %arg10: memref<32x32xbf16, #tpu.memory_space<vmem>>, %arg11: memref<32x32xbf16, #tpu.memory_space<vmem>>, %arg12: memref<1x32xf32, #tpu.memory_space<vmem>>, %arg13: memref<1x32xf32, #tpu.memory_space<vmem>>, %arg14: memref<1x1xf32, #tpu.memory_space<vmem>>, %arg15: memref<8x8xf32, #tpu.memory_space<vmem>>, %arg16: memref<8x1xf32, #tpu.memory_space<vmem>>, %arg17: memref<8x32xf32, #tpu.memory_space<vmem>>) attributes {dimension_semantics = [#tpu.dimension_semantics<parallel>, #tpu.dimension_semantics<arbitrary>], iteration_bounds = array<i64: 1, 1>, scalar_prefetch = 0 : i64, scratch_operands = 1 : i64, tpu.core_type = #tpu.core_type<tc>, window_params = [{transform_indices = @transform_0, window_bounds = array<i64: 8, 32>}, {transform_indices = @transform_1, window_bounds = array<i64: 8, 8, 32>}, {pipeline_mode = #tpu.pipeline_mode<synchronous>, transform_indices = @transform_2, window_bounds = array<i64: 32, 32>}, {pipeline_mode = #tpu.pipeline_mode<synchronous>, transform_indices = @transform_3, window_bounds = array<i64: 1, 32>}, {pipeline_mode = #tpu.pipeline_mode<synchronous>, transform_indices = @transform_4, window_bounds = array<i64: 32, 32>}, {pipeline_mode = #tpu.pipeline_mode<synchronous>, transform_indices = @transform_5, window_bounds = array<i64: 1, 32>}, {pipeline_mode = #tpu.pipeline_mode<synchronous>, transform_indices = @transform_6, window_bounds = array<i64: 1, 32>}, {pipeline_mode = #tpu.pipeline_mode<synchronous>, transform_indices = @transform_7, window_bounds = array<i64: 1, 1>}, {pipeline_mode = #tpu.pipeline_mode<synchronous>, transform_indices = @transform_8, window_bounds = array<i64: 32, 32>}, {pipeline_mode = #tpu.pipeline_mode<synchronous>, transform_indices = @transform_9, window_bounds = array<i64: 32, 32>}, {pipeline_mode = #tpu.pipeline_mode<synchronous>, transform_indices = @transform_10, window_bounds = array<i64: 1, 32>}, {pipeline_mode = #tpu.pipeline_mode<synchronous>, transform_indices = @transform_11, window_bounds = array<i64: 1, 32>}, {pipeline_mode = #tpu.pipeline_mode<synchronous>, transform_indices = @transform_12, window_bounds = array<i64: 1, 1>}, {transform_indices = @transform_13, window_bounds = array<i64: 8, 8>}, {transform_indices = @transform_14, window_bounds = array<i64: 8, 1>}]} {
    %c0_i32 = arith.constant 0 : i32
    %0 = arith.cmpi eq, %arg1, %c0_i32 : i32
    %1 = arith.extui %0 : i1 to i32
    %c0_i32_0 = arith.constant 0 : i32
    %2 = arith.cmpi ne, %1, %c0_i32_0 : i32
    scf.if %2 {
      %c0_15 = arith.constant 0 : index
      %c0_16 = arith.constant 0 : index
      %23 = vector.load %arg2[%c0_15, %c0_16] : memref<8x32xbf16, #tpu.memory_space<vmem>>, vector<8x32xbf16>
      %c0_17 = arith.constant 0 : index
      %c0_18 = arith.constant 0 : index
      %24 = vector.load %arg4[%c0_17, %c0_18] : memref<32x32xbf16, #tpu.memory_space<vmem>>, vector<32x32xbf16>
      %cst_19 = arith.constant dense<0.000000e+00> : vector<8x32xf32>
      %25 = tpu.matmul %23, %24, %cst_19 {dimension_numbers = #tpu.dot_dimension_numbers<[1], [0], [0], [1], [0, 0, 1, 1], [], []>} : vector<8x32xbf16>, vector<32x32xbf16>, vector<8x32xf32> -> vector<8x32xf32>
      %c0_20 = arith.constant 0 : index
      %c0_21 = arith.constant 0 : index
      %26 = vector.load %arg5[%c0_20, %c0_21] : memref<1x32xf32, #tpu.memory_space<vmem>>, vector<1x32xf32>
      %27 = vector.broadcast %26 : vector<1x32xf32> to vector<8x32xf32>
      %28 = arith.addf %25, %27 : vector<8x32xf32>
      %cst_22 = arith.constant 0.000000e+00 : f32
      %29 = vector.broadcast %cst_22 : f32 to vector<8x32xf32>
      %30 = arith.maximumf %28, %29 : vector<8x32xf32>
      %31 = arith.truncf %30 : vector<8x32xf32> to vector<8x32xbf16>
      %c0_23 = arith.constant 0 : index
      %c0_24 = arith.constant 0 : index
      %32 = vector.load %arg6[%c0_23, %c0_24] : memref<32x32xbf16, #tpu.memory_space<vmem>>, vector<32x32xbf16>
      %cst_25 = arith.constant dense<0.000000e+00> : vector<8x32xf32>
      %33 = tpu.matmul %31, %32, %cst_25 {dimension_numbers = #tpu.dot_dimension_numbers<[1], [0], [0], [1], [0, 0, 1, 1], [], []>} : vector<8x32xbf16>, vector<32x32xbf16>, vector<8x32xf32> -> vector<8x32xf32>
      %c0_26 = arith.constant 0 : index
      %c0_27 = arith.constant 0 : index
      %34 = vector.load %arg7[%c0_26, %c0_27] : memref<1x32xf32, #tpu.memory_space<vmem>>, vector<1x32xf32>
      %35 = vector.broadcast %34 : vector<1x32xf32> to vector<8x32xf32>
      %36 = arith.addf %33, %35 : vector<8x32xf32>
      %cst_28 = arith.constant 0.000000e+00 : f32
      %37 = vector.broadcast %cst_28 : f32 to vector<8x32xf32>
      %38 = arith.maximumf %36, %37 : vector<8x32xf32>
      %c0_29 = arith.constant 0 : index
      %c0_30 = arith.constant 0 : index
      %39 = vector.load %arg8[%c0_29, %c0_30] : memref<1x32xf32, #tpu.memory_space<vmem>>, vector<1x32xf32>
      %40 = vector.broadcast %39 : vector<1x32xf32> to vector<8x32xf32>
      %41 = arith.mulf %38, %40 : vector<8x32xf32>
      %cst_31 = arith.constant dense<0.000000e+00> : vector<8xf32>
      %42 = vector.multi_reduction <add>, %41, %cst_31 [1] : vector<8x32xf32> to vector<8xf32>
      %43 = vector.shape_cast %42 : vector<8xf32> to vector<8x1xf32>
      %c0_32 = arith.constant 0 : index
      %c0_33 = arith.constant 0 : index
      %44 = vector.load %arg9[%c0_32, %c0_33] : memref<1x1xf32, #tpu.memory_space<vmem>>, vector<1x1xf32>
      %45 = vector.broadcast %44 : vector<1x1xf32> to vector<8x1xf32>
      %46 = arith.addf %43, %45 : vector<8x1xf32>
      %c0_34 = arith.constant 0 : index
      %c0_35 = arith.constant 0 : index
      %47 = vector.load %arg16[%c0_34, %c0_35] : memref<8x1xf32, #tpu.memory_space<vmem>>, vector<8x1xf32>
      tpu.vector_store %arg16[%c0_34, %c0_35], %46 {strides = array<i32>} : memref<8x1xf32, #tpu.memory_space<vmem>>, vector<8x1xf32>,
      %c0_36 = arith.constant 0 : index
      %c0_37 = arith.constant 0 : index
      %48 = vector.load %arg10[%c0_36, %c0_37] : memref<32x32xbf16, #tpu.memory_space<vmem>>, vector<32x32xbf16>
      %cst_38 = arith.constant dense<0.000000e+00> : vector<8x32xf32>
      %49 = tpu.matmul %31, %48, %cst_38 {dimension_numbers = #tpu.dot_dimension_numbers<[1], [0], [0], [1], [0, 0, 1, 1], [], []>} : vector<8x32xbf16>, vector<32x32xbf16>, vector<8x32xf32> -> vector<8x32xf32>
      %c0_39 = arith.constant 0 : index
      %c0_40 = arith.constant 0 : index
      %50 = vector.load %arg12[%c0_39, %c0_40] : memref<1x32xf32, #tpu.memory_space<vmem>>, vector<1x32xf32>
      %51 = vector.broadcast %50 : vector<1x32xf32> to vector<8x32xf32>
      %52 = arith.addf %49, %51 : vector<8x32xf32>
      %c0_41 = arith.constant 0 : index
      %c0_42 = arith.constant 0 : index
      %53 = vector.load %arg17[%c0_41, %c0_42] : memref<8x32xf32, #tpu.memory_space<vmem>>, vector<8x32xf32>
      tpu.vector_store %arg17[%c0_41, %c0_42], %52 {strides = array<i32>} : memref<8x32xf32, #tpu.memory_space<vmem>>, vector<8x32xf32>,
    } else {
    }
    %c0 = arith.constant 0 : index
    %c0_1 = arith.constant 0 : index
    %c0_2 = arith.constant 0 : index
    %3 = vector.load %arg3[%c0, %c0_1, %c0_2] : memref<8x8x32xbf16, #tpu.memory_space<vmem>>, vector<8x8x32xbf16>
    %4 = vector.shape_cast %3 : vector<8x8x32xbf16> to vector<64x32xbf16>
    %c0_3 = arith.constant 0 : index
    %c0_4 = arith.constant 0 : index
    %5 = vector.load %arg11[%c0_3, %c0_4] : memref<32x32xbf16, #tpu.memory_space<vmem>>, vector<32x32xbf16>
    %cst = arith.constant dense<0.000000e+00> : vector<64x32xf32>
    %6 = tpu.matmul %4, %5, %cst {dimension_numbers = #tpu.dot_dimension_numbers<[1], [0], [0], [1], [0, 0, 1, 1], [], []>} : vector<64x32xbf16>, vector<32x32xbf16>, vector<64x32xf32> -> vector<64x32xf32>
    %7 = vector.shape_cast %6 : vector<64x32xf32> to vector<8x8x32xf32>
    %c0_5 = arith.constant 0 : index
    %c0_6 = arith.constant 0 : index
    %8 = vector.load %arg17[%c0_5, %c0_6] : memref<8x32xf32, #tpu.memory_space<vmem>>, vector<8x32xf32>
    %9 = vector.shape_cast %8 : vector<8x32xf32> to vector<8x1x32xf32>
    %10 = vector.broadcast %9 : vector<8x1x32xf32> to vector<8x8x32xf32>
    %11 = arith.addf %7, %10 : vector<8x8x32xf32>
    %cst_7 = arith.constant 0.000000e+00 : f32
    %12 = vector.broadcast %cst_7 : f32 to vector<8x8x32xf32>
    %13 = arith.maximumf %11, %12 : vector<8x8x32xf32>
    %c0_8 = arith.constant 0 : index
    %c0_9 = arith.constant 0 : index
    %14 = vector.load %arg13[%c0_8, %c0_9] : memref<1x32xf32, #tpu.memory_space<vmem>>, vector<1x32xf32>
    %15 = vector.shape_cast %14 : vector<1x32xf32> to vector<1x1x32xf32>
    %16 = vector.broadcast %15 : vector<1x1x32xf32> to vector<8x8x32xf32>
    %17 = arith.mulf %13, %16 : vector<8x8x32xf32>
    %cst_10 = arith.constant dense<0.000000e+00> : vector<8x8xf32>
    %18 = vector.multi_reduction <add>, %17, %cst_10 [2] : vector<8x8x32xf32> to vector<8x8xf32>
    %c0_11 = arith.constant 0 : index
    %c0_12 = arith.constant 0 : index
    %19 = vector.load %arg14[%c0_11, %c0_12] : memref<1x1xf32, #tpu.memory_space<vmem>>, vector<1x1xf32>
    %20 = vector.broadcast %19 : vector<1x1xf32> to vector<8x8xf32>
    %21 = arith.addf %18, %20 : vector<8x8xf32>
    %c0_13 = arith.constant 0 : index
    %c0_14 = arith.constant 0 : index
    %22 = vector.load %arg15[%c0_13, %c0_14] : memref<8x8xf32, #tpu.memory_space<vmem>>, vector<8x8xf32>
    tpu.vector_store %arg15[%c0_13, %c0_14], %21 {strides = array<i32>} : memref<8x8xf32, #tpu.memory_space<vmem>>, vector<8x8xf32>,
    return
  }
  func.func @transform_0(%arg0: i32, %arg1: i32) -> (i32, i32) {
    %c0_i32 = arith.constant 0 : i32
    %c0_i32_0 = arith.constant 0 : i32
    return %arg0, %c0_i32 : i32, i32
  }
  func.func @transform_1(%arg0: i32, %arg1: i32) -> (i32, i32, i32) {
    %c0_i32 = arith.constant 0 : i32
    %c0_i32_0 = arith.constant 0 : i32
    return %arg0, %arg1, %c0_i32 : i32, i32, i32
  }
  func.func @transform_2(%arg0: i32, %arg1: i32) -> (i32, i32) {
    %c0_i32 = arith.constant 0 : i32
    %c0_i32_0 = arith.constant 0 : i32
    %c0_i32_1 = arith.constant 0 : i32
    return %c0_i32, %c0_i32_0 : i32, i32
  }
  func.func @transform_3(%arg0: i32, %arg1: i32) -> (i32, i32) {
    %c0_i32 = arith.constant 0 : i32
    %c0_i32_0 = arith.constant 0 : i32
    %c0_i32_1 = arith.constant 0 : i32
    return %c0_i32, %c0_i32_0 : i32, i32
  }
  func.func @transform_4(%arg0: i32, %arg1: i32) -> (i32, i32) {
    %c0_i32 = arith.constant 0 : i32
    %c0_i32_0 = arith.constant 0 : i32
    %c0_i32_1 = arith.constant 0 : i32
    return %c0_i32, %c0_i32_0 : i32, i32
  }
  func.func @transform_5(%arg0: i32, %arg1: i32) -> (i32, i32) {
    %c0_i32 = arith.constant 0 : i32
    %c0_i32_0 = arith.constant 0 : i32
    %c0_i32_1 = arith.constant 0 : i32
    return %c0_i32, %c0_i32_0 : i32, i32
  }
  func.func @transform_6(%arg0: i32, %arg1: i32) -> (i32, i32) {
    %c0_i32 = arith.constant 0 : i32
    %c0_i32_0 = arith.constant 0 : i32
    %c0_i32_1 = arith.constant 0 : i32
    return %c0_i32, %c0_i32_0 : i32, i32
  }
  func.func @transform_7(%arg0: i32, %arg1: i32) -> (i32, i32) {
    %c0_i32 = arith.constant 0 : i32
    %c0_i32_0 = arith.constant 0 : i32
    %c0_i32_1 = arith.constant 0 : i32
    return %c0_i32, %c0_i32_0 : i32, i32
  }
  func.func @transform_8(%arg0: i32, %arg1: i32) -> (i32, i32) {
    %c0_i32 = arith.constant 0 : i32
    %c0_i32_0 = arith.constant 0 : i32
    %c0_i32_1 = arith.constant 0 : i32
    return %c0_i32, %c0_i32_0 : i32, i32
  }
  func.func @transform_9(%arg0: i32, %arg1: i32) -> (i32, i32) {
    %c0_i32 = arith.constant 0 : i32
    %c0_i32_0 = arith.constant 0 : i32
    %c0_i32_1 = arith.constant 0 : i32
    return %c0_i32, %c0_i32_0 : i32, i32
  }
  func.func @transform_10(%arg0: i32, %arg1: i32) -> (i32, i32) {
    %c0_i32 = arith.constant 0 : i32
    %c0_i32_0 = arith.constant 0 : i32
    %c0_i32_1 = arith.constant 0 : i32
    return %c0_i32, %c0_i32_0 : i32, i32
  }
  func.func @transform_11(%arg0: i32, %arg1: i32) -> (i32, i32) {
    %c0_i32 = arith.constant 0 : i32
    %c0_i32_0 = arith.constant 0 : i32
    %c0_i32_1 = arith.constant 0 : i32
    return %c0_i32, %c0_i32_0 : i32, i32
  }
  func.func @transform_12(%arg0: i32, %arg1: i32) -> (i32, i32) {
    %c0_i32 = arith.constant 0 : i32
    %c0_i32_0 = arith.constant 0 : i32
    %c0_i32_1 = arith.constant 0 : i32
    return %c0_i32, %c0_i32_0 : i32, i32
  }
  func.func @transform_13(%arg0: i32, %arg1: i32) -> (i32, i32) {
    %c0_i32 = arith.constant 0 : i32
    return %arg0, %arg1 : i32, i32
  }
  func.func @transform_14(%arg0: i32, %arg1: i32) -> (i32, i32) {
    %c0_i32 = arith.constant 0 : i32
    %c0_i32_0 = arith.constant 0 : i32
    return %arg0, %c0_i32 : i32, i32
  }
}

</mosaic_0001>

<bundles_post_ra>
// kernel: tpu_custom_call.1
= control target key start
LH: loop header
LB: loop body
LE: loop exit
PB: predicated region body
PF: predicated region fallthrough
CT: control target
= control target key end

     0   :  { %s884_s0 = inlined_call_operand.vmem [shape: bf16[8,32], index: 0, kind: input, shape index: {}]   ;;  %s885_s1 = inlined_call_operand.hbm [shape: bf16[8,8,32], index: 1, kind: input, shape index: {}]   ;;  %s886_s2 = inlined_call_operand.hbm [shape: bf16[32,32], index: 2, kind: input, shape index: {}]   ;;  %s887_s3 = inlined_call_operand.vmem [shape: f32[1,32], index: 3, kind: input, shape index: {}]   ;;  %s888_s4 = inlined_call_operand.hbm [shape: bf16[32,32], index: 4, kind: input, shape index: {}]   ;;  %s889_s5 = inlined_call_operand.vmem [shape: f32[1,32], index: 5, kind: input, shape index: {}]   ;;  %s890_s6 = inlined_call_operand.vmem [shape: f32[1,32], index: 6, kind: input, shape index: {}]   ;;  %s891_s7 = inlined_call_operand.<no memory space> [shape: f32[1,1], index: 7, kind: input, shape index: {}]   ;;  %s892_s8 = inlined_call_operand.hbm [shape: bf16[32,32], index: 8, kind: input, shape index: {}]   ;;  %s893_s9 = inlined_call_operand.hbm [shape: bf16[32,32], index: 9, kind: input, shape index: {}]   ;;  %s894_s10 = inlined_call_operand.vmem [shape: f32[1,32], index: 10, kind: input, shape index: {}]   ;;  %s895_s11 = inlined_call_operand.vmem [shape: f32[1,32], index: 11, kind: input, shape index: {}]   ;;  %s896_s13 = inlined_call_operand.hbm [shape: f32[8,8], index: 13, kind: output, shape index: {0}]   ;;  %s897_s14 = inlined_call_operand.vmem [shape: f32[8,1], index: 14, kind: output, shape index: {1}]   ;;  %s898_s12 = inlined_call_operand.<no memory space> [shape: f32[1,1], index: 12, kind: input, shape index: {}]  }
   0x1   :  { %v20_v0 = vstv %s891_s7  ;;  %v22_v1 = vstv %s898_s12 }
   0x2   :  { %21 = vst [vmem:[#allocation3] sm:$0x1] %v20_v0 }
   0x3   :  { %23 = vst [vmem:[#allocation4] sm:$0x1] %v22_v1 }
   0x4   :  { %24 = vsyncpa [#allocation6], 0 }
   0x5   :  { %25 = vsyncpa [#allocation9], 0 }
   0x6   :  { %26 = vsyncpa [#allocation12], 0 }
   0x7   :  { %27 = vsyncpa [#allocation7], 0  ;;  %s47_s19 = sshll.u32 %s886_s2, 4  ;;  %s735_s20 = smov [#allocation8]   ;;  %s48_s19 = int_to_ptr.hbm [resolvable:$true] %s47_s19 }
   0x8   :  { %s49_s21 = sshll.u32 %s735_s20, 4  ;;  %s81_s23 = sshll.u32 %s892_s8, 4  ;;  %s50_s21 = int_to_ptr.vmem [resolvable:$true] %s49_s21  ;;  %s82_s23 = int_to_ptr.hbm [resolvable:$true] %s81_s23 }
   0x9   :  { %s736_s24 = smov 64   ;;  %s737_s12 = smov 4  }
   0xa   :  { %55 = dma.hbm_to_vmem [thread:$0]  %s48_s19, 256, %s50_s21, [#allocation9], %s736_s24, %s736_s24, %s737_s12  }
   0xb   :  { %s738_s25 = smov [#allocation11]   ;;  %s34_s29 = sshll.u32 %s885_s1, 4  ;;  %s35_s29 = int_to_ptr.hbm [resolvable:$true] %s34_s29 }
   0xc   :  { %s83_s26 = sshll.u32 %s738_s25, 4  ;;  %s62_s15 = sshll.u32 %s888_s4, 4  ;;  %s84_s26 = int_to_ptr.vmem [resolvable:$true] %s83_s26  ;;  %s63_s15 = int_to_ptr.hbm [resolvable:$true] %s62_s15 }
   0xd   :  { %89 = dma.hbm_to_vmem [thread:$0]  %s82_s23, 256, %s84_s26, [#allocation12], %s736_s24, %s736_s24, %s737_s12  }
   0xe   :  { %s739_s16 = smov [#allocation5]   ;;  %s740_s8 = smov [#allocation10]  }
   0xf   :  { %s36_s17 = sshll.u32 %s739_s16, 4  ;;  %s64_s18 = sshll.u32 %s740_s8, 4  ;;  %s37_s17 = int_to_ptr.vmem [resolvable:$true] %s36_s17  ;;  %s65_s18 = int_to_ptr.vmem [resolvable:$true] %s64_s18 }
  0x10   :  { %42 = dma.hbm_to_vmem [thread:$0]  %s35_s29, 512, %s37_s17, [#allocation6], %s736_s24, %s736_s24, %s737_s12  }
  0x11   :  { %s94_s21 = sshll.u32 %s893_s9, 4  ;;  %s741_s1 = smov [#allocation13]   ;;  %s95_s21 = int_to_ptr.hbm [resolvable:$true] %s94_s21 }
  0x12   :  { %70 = dma.hbm_to_vmem [thread:$0]  %s63_s15, 256, %s65_s18, [#allocation9], %s736_s24, %s736_s24, %s737_s12  }
  0x13   :  { %s96_s22 = sshll.u32 %s741_s1, 4  ;;  %s97_s22 = int_to_ptr.vmem [resolvable:$true] %s96_s22 }
  0x14   :  { %102 = dma.hbm_to_vmem [thread:$0]  %s95_s21, 256, %s97_s22, [#allocation12], %s736_s24, %s736_s24, %s737_s12  }
  0x15   :  { %727 = dma.done.wait [#allocation6], 512  }
  0x16   :  { %728 = vsyncadd [#allocation6], 4294966784 }
  0x17   :  { %729 = dma.done.wait [#allocation9], 512  }
  0x18   :  { %730 = vsyncadd [#allocation9], 4294966784 }
  0x19   :  { %731 = dma.done.wait [#allocation12], 512  }
  0x1a   :  { %732 = vsyncadd [#allocation12], 4294966784  ;;  %v552_v2 = vld [vmem:[#allocation8 + $0x8] sm:$0xff]  ;;  %v551_v3 = vld [vmem:[#allocation8] sm:$0xff]  ;;  %vm155_vm0 = vcmask 261120   ;;  %v742_v1 = vmov 0  }
  0x1b   :  { %v562_v4 = vld [vmem:[#allocation13 + $0x8] sm:$0xff]  ;;  %165 = vmatpush.bf16.msra.mxu1 %v552_v2  ;;  %v561_v5 = vld [vmem:[#allocation13] sm:$0xff]  ;;  %v556_v9 = vld [vmem:[#allocation11 + $0x8] sm:$0xff]  ;;  %574 = vset.pattern.permute.xlu1 %v742_v1  ;;  %vm224_vm1 = vcmask 7168   ;;  %vm456_vm2 = vcmask 1041409   ;;  %vm458_vm3 = vcmask 1042434  }
  0x1c   :  { %563 = vmatpush.bf16.msra.mxu3 %v562_v4  ;;  %323 = vmatpush.bf16.msra.mxu0 %v562_v4  ;;  %v134_v6 = vld [vmem:[%s884_s0] sm:$0xf]  ;;  %v557_v10 = vld [vmem:[#allocation5] sm:$0xff]  ;;  %v558_v14 = vld [vmem:[#allocation5 + $0x8] sm:$0xff]  ;;  %vm460_vm4 = vcmask 1043459   ;;  %vm462_vm5 = vcmask 1044484  }
  0x1d   :  { %v559_v7 = vld [vmem:[#allocation5 + $0x10] sm:$0xff]  ;;  %v554_v8 = vld [vmem:[#allocation10 + $0x8] sm:$0xff]  ;;  %252 = vmatpush.bf16.msra.mxu2 %v556_v9  ;;  %v555_v12 = vld [vmem:[#allocation11] sm:$0xff]  ;;  %575 = vset.pattern.permute.xlu0 %v742_v1  ;;  %vm464_vm6 = vcmask 1045509   ;;  %vm466_vm7 = vcmask 1046534   ;;  %s743_s27 = smov [#allocation14]  }
  0x1e   :  { %v553_v11 = vld [vmem:[#allocation10] sm:$0xff]  ;;  %v560_v13 = vld [vmem:[#allocation5 + $0x18] sm:$0xff]  ;;  %s478_s28 = sshll.u32 %s743_s27, 4  ;;  %s480_s30 = sshll.u32 %s896_s13, 4  ;;  %vm468_vm8 = vcmask 1047559   ;;  %vm471_vm9 = vcmask 64512   ;;  %s479_s28 = int_to_ptr.vmem [resolvable:$true] %s478_s28  ;;  %s481_s30 = int_to_ptr.hbm [resolvable:$true] %s480_s30 }
  0x1f   :  { %166 = vmatpush.bf16.msra.mxu1 %v551_v3  ;;  %v576_v15 = vld [vmem:[%s887_s3] ss:$0 sm:$0xff] }
  0x20   :  { %564 = vmatpush.bf16.msra.mxu3 %v561_v5  ;;  %324 = vmatpush.bf16.msra.mxu0 %v561_v5  ;;  %v578_v24 = vld [vmem:[%s894_s10] ss:$0 sm:$0xff] }
  0x21   :  { %253 = vmatpush.bf16.msra.mxu2 %v555_v12  ;;  %v579_v42 = vld [vmem:[%s895_s11] ss:$0 sm:$0xff] }
  0x22   :  { %504 = vmatmul.msk.bf16.vlgmr.msra.gmra.mxu1 %vm155_vm0, %v134_v6 }
  0x23   :  { %549 = vmatmul.msk.bf16.vlgmr.msra.gmra.mxu3 %vm155_vm0, %v559_v7  ;;  %203 = vmatpush.bf16.msrb.mxu1 %v554_v8 }
  0x24   :  { %547 = vmatmul.msk.bf16.vlgmr.msra.gmra.mxu0 %vm155_vm0, %v557_v10  ;;  %v577_v10 = vld [vmem:[%s889_s5] ss:$0 sm:$0xff] }
  0x27   :  { %204 = vmatpush.bf16.msrb.mxu1 %v553_v11 }
  0x33   :  { %550 = vmatmul.msk.bf16.gmra.mxu3 %vm155_vm0, %v560_v13 }
  0x34   :  { %548 = vmatmul.msk.bf16.gmra.mxu0 %vm155_vm0, %v558_v14 }
  0x9f   :  { %v168_v16 = vpop.f32.mrf.mxu1 }
  0xa0   :  { %v169_v17 = vadd.f32 %v576_v15, %v168_v16 }
  0xa1   :  { %v326_v21 = vpop.f32.mrf.mxu0 }
  0xa2   :  { %v172_v18 = vmax.f32 %v169_v17, 0.0 }
  0xa4   :  { %v173_v19 = vpack.c.bf16 %v172_v18, %v172_v18 }
  0xa6   :  { %513 = vmatmul.msk.bf16.vlgmr.msrb.gmra.mxu1 %vm155_vm0, %v173_v19  ;;  %522 = vmatmul.msk.bf16.vlgmr.msra.gmra.mxu2 %vm155_vm0, %v173_v19  ;;  %v336_v25 = vpop.f32.mrf.mxu3 }
  0xa7   :  { %v170_v20 = vpop.f32.mrf.mxu1 }
  0xa9   :  { %v328_v22 = vpop.f32.mrf.mxu0 }
  0xae   :  { %v338_v31 = vpop.f32.mrf.mxu3 }
  0xb1   :  { %v331_v29 = vpop.f32.mrf.mxu0 }
  0xb6   :  { %v341_v55 = vpop.f32.mrf.mxu3 }
  0xb9   :  { %v333_v35 = vpop.f32.mrf.mxu0 }
  0xbe   :  { %v343_v12 = vpop.f32.mrf.mxu3 }
 0x123   :  { %v853_v23 = vpop.f32.mrf.mxu1 }
 0x124   :  { %v207_v16 = vadd.f32 %v577_v10, %v853_v23 }
 0x126   :  { %v210_v20 = vmax.f32 %v207_v16, 0.0 }
 0x129   :  { %v255_v26 = vpop.f32.mrf.mxu2 }
 0x12a   :  { %v256_v27 = vadd.f32 %v578_v24, %v255_v26  ;;  %v581_v26 = vld [vmem:[#allocation4] ss:$0 sm:$0xff] }
 0x12b   :  { %v208_v28 = vpop.f32.mrf.mxu1 }
 0x12c   :  { %259 = vst.msk [vmem:[#allocation2] sm:$0xff] %vm155_vm0, %v256_v27 }
 0x131   :  { %v257_v30 = vpop.f32.mrf.mxu2 }
 0x133   :  { %v346_v32 = vld [vmem:[#allocation2] sm:$0xff] }
 0x134   :  { %v349_v33 = vrot.slane %v346_v32, 2  ;;  %v350_v34 = vrot.slane %v346_v32, 3  ;;  %v355_v36 = vperm.slane %v346_v32, 0  ;;  %v348_v37 = vrot.slane %v346_v32, 1 }
 0x135   :  { %v351_v38 = vrot.slane %v346_v32, 4  ;;  %v352_v49 = vrot.slane %v346_v32, 5  ;;  %v353_v51 = vrot.slane %v346_v32, 6  ;;  %v354_v2 = vrot.slane %v346_v32, 7 }
 0x136   :  { %v357_v39 = vperm.slane %v349_v33, 0  ;;  %v358_v40 = vperm.slane %v350_v34, 0  ;;  %v371_v41 = vadd.f32 %v355_v36, %v326_v21  ;;  %v356_v43 = vperm.slane %v348_v37, 0  ;;  %v582_v36 = vld [vmem:[#allocation3] ss:$0 sm:$0xff] }
 0x137   :  { %v359_v44 = vperm.slane %v351_v38, 0  ;;  %v360_v60 = vperm.slane %v352_v49, 0  ;;  %v361_v61 = vperm.slane %v353_v51, 0  ;;  %v362_v7 = vperm.slane %v354_v2, 0 }
 0x138   :  { %v373_v45 = vadd.f32 %v357_v39, %v331_v29  ;;  %v374_v46 = vadd.f32 %v358_v40, %v333_v35  ;;  %v379_v47 = vmax.f32 %v371_v41, 0.0  ;;  %v372_v48 = vadd.f32 %v356_v43, %v328_v22  ;;  %v580_v22 = vld [vmem:[%s890_s6] ss:$0 sm:$0xff] }
 0x139   :  { %v375_v53 = vadd.f32 %v359_v44, %v336_v25  ;;  %v376_v4 = vadd.f32 %v360_v60, %v338_v31  ;;  %v377_v5 = vadd.f32 %v361_v61, %v341_v55  ;;  %v378_v14 = vadd.f32 %v362_v7, %v343_v12 }
 0x13a   :  { %v381_v50 = vmax.f32 %v373_v45, 0.0  ;;  %v382_v52 = vmax.f32 %v374_v46, 0.0  ;;  %v391_v54 = vmul.f32 %v579_v42, %v379_v47  ;;  %v380_v59 = vmax.f32 %v372_v48, 0.0 }
 0x13b   :  { %v383_v0 = vmax.f32 %v375_v53, 0.0  ;;  %v384_v9 = vmax.f32 %v376_v4, 0.0  ;;  %v385_v11 = vmax.f32 %v377_v5, 0.0  ;;  %v386_v18 = vmax.f32 %v378_v14, 0.0 }
 0x13c   :  { %v394_v56 = vmul.f32 %v579_v42, %v382_v52  ;;  %v393_v57 = vmul.f32 %v579_v42, %v381_v50  ;;  %v399_v58 = vsel %vm155_vm0, %v391_v54, 0.0  ;;  %v392_v3 = vmul.f32 %v579_v42, %v380_v59 }
 0x13d   :  { %400 = vadd.xlane.f32.xlu0 %v399_v58  ;;  %v395_v6 = vmul.f32 %v579_v42, %v383_v0  ;;  %v396_v15 = vmul.f32 %v579_v42, %v384_v9  ;;  %v397_v17 = vmul.f32 %v579_v42, %v385_v11  ;;  %v398_v24 = vmul.f32 %v579_v42, %v386_v18 }
 0x13e   :  { %v408_v62 = vsel %vm155_vm0, %v394_v56, 0.0  ;;  %v405_v63 = vsel %vm155_vm0, %v393_v57, 0.0  ;;  %v402_v8 = vsel %vm155_vm0, %v392_v3, 0.0  ;;  %v215_v25 = vmul.f32 %v580_v22, %v210_v20 }
 0x13f   :  { %409 = vadd.xlane.f32.xlu2 %v408_v62  ;;  %406 = vadd.xlane.f32.xlu1 %v405_v63  ;;  %v411_v13 = vsel %vm155_vm0, %v395_v6, 0.0  ;;  %v414_v19 = vsel %vm155_vm0, %v396_v15, 0.0  ;;  %v417_v21 = vsel %vm155_vm0, %v397_v17, 0.0  ;;  %v420_v27 = vsel %vm155_vm0, %v398_v24, 0.0 }
 0x140   :  { %v216_v23 = vsel %vm155_vm0, %v215_v25, 0.0  ;;  %v446_v35 = vlaneseq }
 0x142   :  { %v447_v37 = vand.u32 127, %v446_v35 }
 0x145   :  { %403 = vadd.xlane.f32.xlu0 %v402_v8 }
 0x147   :  { %412 = vadd.xlane.f32.xlu2 %v411_v13 }
 0x14d   :  { %415 = vadd.xlane.f32.xlu0 %v414_v19 }
 0x14f   :  { %418 = vadd.xlane.f32.xlu2 %v417_v21 }
 0x155   :  { %421 = vadd.xlane.f32.xlu0 %v420_v27 }
 0x157   :  { %217 = vadd.xlane.f32.xlu2 %v216_v23 }
 0x158   :  { %427 = vperm.xlu1 %574, %v581_v26  }
 0x1b0   :  { %v401_v28 = vpop.xlane.xlu0 %400 }
 0x1b2   :  { %v410_v29 = vpop.xlane.xlu2 %409  ;;  %v407_v32 = vpop.xlane.xlu1 %406 }
 0x1b8   :  { %v404_v30 = vpop.xlane.xlu0 %403 }
 0x1ba   :  { %v413_v31 = vpop.xlane.xlu2 %412 }
 0x1c0   :  { %v416_v34 = vpop.xlane.xlu0 %415 }
 0x1c2   :  { %v419_v33 = vpop.xlane.xlu2 %418 }
 0x1c8   :  { %v422_v50 = vpop.xlane.xlu0 %421 }
 0x1ca   :  { %v428_v38 = vpop.permute.xlu1 %427  ;;  %v218_v39 = vpop.xlane.xlu2 %217 }
 0x1cb   :  { %v430_v40 = vadd.f32 %v428_v38, %v401_v28  ;;  %v431_v41 = vadd.f32 %v428_v38, %v404_v30  ;;  %v432_v42 = vadd.f32 %v428_v38, %v407_v32  ;;  %v433_v43 = vadd.f32 %v428_v38, %v410_v29 }
 0x1cc   :  { %v434_v44 = vadd.f32 %v428_v38, %v413_v31  ;;  %v223_v45 = vadd.f32 %v582_v36, %v218_v39  ;;  %v435_v46 = vadd.f32 %v428_v38, %v416_v34  ;;  %v436_v51 = vadd.f32 %v428_v38, %v419_v33 }
 0x1cd   :  { %v448_v47 = vperm.slane %v430_v40, %v447_v37  ;;  %v449_v48 = vperm.slane %v431_v41, %v447_v37  ;;  %v450_v49 = vperm.slane %v432_v42, %v447_v37  ;;  %v451_v52 = vperm.slane %v433_v43, %v447_v37 }
 0x1ce   :  { %225 = vst.msk [vmem:[%s897_s14] sm:$0xff] %vm224_vm1, %v223_v45  ;;  %v437_v53 = vadd.f32 %v428_v38, %v422_v50  ;;  %v452_v55 = vperm.slane %v434_v44, %v447_v37  ;;  %v453_v57 = vperm.slane %v435_v46, %v447_v37  ;;  %v454_v59 = vperm.slane %v436_v51, %v447_v37 }
 0x1cf   :  { %v457_v54 = vsel %vm456_vm2, %v449_v48, %v448_v47 }
 0x1d0   :  { %v459_v56 = vsel %vm458_vm3, %v450_v49, %v457_v54  ;;  %v455_v61 = vperm.slane %v437_v53, %v447_v37 }
 0x1d1   :  { %v461_v58 = vsel %vm460_vm4, %v451_v52, %v459_v56 }
 0x1d2   :  { %v463_v60 = vsel %vm462_vm5, %v452_v55, %v461_v58 }
 0x1d3   :  { %v465_v62 = vsel %vm464_vm6, %v453_v57, %v463_v60 }
 0x1d4   :  { %v467_v63 = vsel %vm466_vm7, %v454_v59, %v465_v62 }
 0x1d5   :  { %v469_v0 = vsel %vm468_vm8, %v455_v61, %v467_v63 }
 0x1d6   :  { %472 = vst.msk [vmem:[#allocation14] sm:$0xff] %vm471_vm9, %v469_v0 }
 0x1d7   :  { %483 = dma.vmem_to_hbm [thread:$0]  %s479_s28, 128, %s481_s30, [#allocation7]  }
 0x1d8   :  { %733 = dma.done.wait [#allocation7], 128  }
 0x1d9   :  { %734 = vsyncadd [#allocation7], 4294967168 }
 0x1da   :  { %492 = vsyncpa [#allocation6], 1 }
 0x1db   :  { %493 = vsyncpa [#allocation9], 1 }
 0x1dc   :  { %494 = vsyncpa [#allocation12], 1 }
 0x1dd   :  { %495 = vsyncpa [#allocation7], 1 }

</bundles_post_ra>
